<compile_context>
chip_gen: v5e
topology: v5e:2x2
jax: 0.10.0
libtpu: 0.0.40
codegen_flags: <defaults>
</compile_context>

<pallas_src>
import jax
import jax.numpy as jnp
from jax.experimental import pallas as pl
from jax.experimental.pallas import tpu as pltpu


def _relu_kernel(x_ref, o_ref):
    # Elementwise hot path: ReLU on the whole VMEM tile (pure VPU work).
    o_ref[...] = jnp.maximum(x_ref[...], jnp.zeros((), dtype=x_ref.dtype))


_LANE = 128
_TARGET_BLOCK_BYTES = 4 << 20  # ~4 MiB per buffer


def _choose_width(n, row_align):
    """Widest lane-dense slab width dividing n exactly (no pad/slice).

    First pass prefers widths whose resulting row count is a multiple of the
    sublane-packing factor (fully packed vregs); second pass only requires
    exact divisibility.
    """
    candidates = (4096, 2048, 1024, 512, 256, 128)
    for w in candidates:
        if n % w == 0 and (n // w) % row_align == 0:
            return w
    for w in candidates:
        if n % w == 0:
            return w
    return None


def _choose_block_rows(rows, width, itemsize, row_align):
    """Rows per block: ~_TARGET_BLOCK_BYTES per buffer, packing-aligned."""
    if rows <= row_align:
        return rows  # single full-array block (valid even if unaligned)
    tm = (_TARGET_BLOCK_BYTES // (width * itemsize)) // row_align * row_align
    tm = max(row_align, tm)
    if tm >= rows:
        # Whole array would be one block; split into >=2 grid steps so both
        # v7x TensorCores are used (near-free on 1-TC v5e/v6e).
        if rows >= 2 * row_align:
            half = pl.cdiv(rows, 2)
            tm = row_align * pl.cdiv(half, row_align)
            tm = min(tm, (rows // row_align) * row_align)
        else:
            tm = rows
    return tm


def mini_forward(x):
    """Forward pass of MINI: x -> ReLU(x). Accepts NCHW (or any shape/dtype)."""
    orig_shape = x.shape
    dtype = x.dtype
    n = x.size
    if n == 0:
        return x
    itemsize = jnp.dtype(dtype).itemsize
    # Sublane packing alignment: 8 rows (f32), 16 (bf16), 32 (int8/fp8).
    row_align = max(8, 32 // itemsize)

    flat = jnp.reshape(x, (-1,))  # reshape of contiguous array: no copy
    width = _choose_width(n, row_align)
    pad = 0
    if width is None:
        # Rare ragged case: zero-pad to a lane multiple (ReLU(0)=0, so safe).
        width = _LANE
        pad = (-n) % width
        flat = jnp.pad(flat, (0, pad))
    rows = flat.size // width
    slab = jnp.reshape(flat, (rows, width))

    tm = _choose_block_rows(rows, width, itemsize, row_align)
    grid = (pl.cdiv(rows, tm),)  # ragged last row-block is masked by Pallas

    out = pl.pallas_call(
        _relu_kernel,
        out_shape=jax.ShapeDtypeStruct((rows, width), dtype),
        grid_spec=pltpu.PrefetchScalarGridSpec(
            num_scalar_prefetch=0,
            grid=grid,
            in_specs=[pl.BlockSpec((tm, width), lambda i: (i, 0))],
            out_specs=pl.BlockSpec((tm, width), lambda i: (i, 0)),
        ),
        compiler_params=pltpu.CompilerParams(
            dimension_semantics=("parallel",),
            # 2 (in+out) x 2 double-buffers x ~4 MiB blocks ~= 16 MiB;
            # 32 MiB raises v5e's 16 MiB scoped default and stays well
            # within v7x's 64 MiB physical VMEM.
            vmem_limit_bytes=32 * 1024 * 1024,
        ),
    )(slab)

    out_flat = jnp.reshape(out, (-1,))
    if pad:
        out_flat = out_flat[:n]
    return jnp.reshape(out_flat, orig_shape)


if __name__ == "__main__":
    key = jax.random.PRNGKey(0)
    # Small NCHW input consistent with the module: (B=2, C=4, H=16, W=16)
    x = jax.random.normal(key, (2, 4, 16, 16), dtype=jnp.float32)

    y = mini_forward(x)
    y = jax.block_until_ready(y)

    # Correctness check against plain JAX ReLU
    y_ref = jnp.maximum(x, 0.0)
    assert y.shape == x.shape and y.dtype == x.dtype
    assert jnp.allclose(y, y_ref), "mismatch vs reference ReLU"

    print("KERNEL_OK")
</pallas_src>

<mosaic_0001>
module attributes {stable_mosaic.version = 11 : i64} {
  func.func @_relu_kernel(%arg0: i32, %arg1: memref<8x256xf32, #tpu.memory_space<vmem>>, %arg2: memref<8x256xf32, #tpu.memory_space<vmem>>) attributes {dimension_semantics = [#tpu.dimension_semantics<parallel>], iteration_bounds = array<i64: 1>, scalar_prefetch = 0 : i64, scratch_operands = 0 : i64, tpu.core_type = #tpu.core_type<tc>, window_params = [{transform_indices = @transform_0, window_bounds = array<i64: 8, 256>}, {transform_indices = @transform_1, window_bounds = array<i64: 8, 256>}]} {
    %c0 = arith.constant 0 : index
    %c0_0 = arith.constant 0 : index
    %0 = vector.load %arg1[%c0, %c0_0] : memref<8x256xf32, #tpu.memory_space<vmem>>, vector<8x256xf32>
    %cst = arith.constant 0.000000e+00 : f32
    %1 = vector.broadcast %cst : f32 to vector<8x256xf32>
    %2 = arith.maximumf %0, %1 : vector<8x256xf32>
    %c0_1 = arith.constant 0 : index
    %c0_2 = arith.constant 0 : index
    %3 = vector.load %arg2[%c0_1, %c0_2] : memref<8x256xf32, #tpu.memory_space<vmem>>, vector<8x256xf32>
    tpu.vector_store %arg2[%c0_1, %c0_2], %2 {strides = array<i32>} : memref<8x256xf32, #tpu.memory_space<vmem>>, vector<8x256xf32>,
    return
  }
  func.func @transform_0(%arg0: i32) -> (i32, i32) {
    %c0_i32 = arith.constant 0 : i32
    %c0_i32_0 = arith.constant 0 : i32
    return %arg0, %c0_i32 : i32, i32
  }
  func.func @transform_1(%arg0: i32) -> (i32, i32) {
    %c0_i32 = arith.constant 0 : i32
    %c0_i32_0 = arith.constant 0 : i32
    return %arg0, %c0_i32 : i32, i32
  }
}

</mosaic_0001>

<bundles_post_ra>
// kernel: tpu_custom_call.1
= control target key start
LH: loop header
LB: loop body
LE: loop exit
PB: predicated region body
PF: predicated region fallthrough
CT: control target
= control target key end

     0   :  { %6 = vsyncpa [#allocation3], 0  ;;  %s118_s0 = inlined_call_operand.hbm [shape: f32[8,256], index: 0, kind: input, shape index: {}]   ;;  %s119_s1 = inlined_call_operand.hbm [shape: f32[8,256], index: 1, kind: output, shape index: {}]  }
   0x1   :  { %7 = vsyncpa [#allocation4], 0  ;;  %s13_s8 = sshll.u32 %s118_s0, 4  ;;  %s100_s9 = smov [#allocation2]   ;;  %s14_s8 = int_to_ptr.hbm [resolvable:$true] %s13_s8 }
   0x2   :  { %s15_s10 = sshll.u32 %s100_s9, 4  ;;  %s16_s10 = int_to_ptr.vmem [resolvable:$true] %s15_s10 }
   0x3   :  { %18 = dma.hbm_to_vmem [thread:$0]  %s14_s8, 256, %s16_s10, [#allocation3]  }
   0x4   :  { %96 = dma.done.wait [#allocation3], 256  }
   0x5   :  { %97 = vsyncadd [#allocation3], 4294967040  ;;  %s101_s11 = smov [#allocation5]   ;;  %s36_s15 = sshll.u32 %s119_s1, 4  ;;  %v23_v0 = vld [vmem:[#allocation2] sm:$0xff]  ;;  %v24_v1 = vld [vmem:[#allocation2 + $0x8] sm:$0xff]  ;;  %s37_s15 = int_to_ptr.hbm [resolvable:$true] %s36_s15 }
   0x6   :  { %s34_s12 = sshll.u32 %s101_s11, 4  ;;  %v25_v2 = vmax.f32 %v23_v0, 0.0  ;;  %v26_v3 = vmax.f32 %v24_v1, 0.0  ;;  %s35_s12 = int_to_ptr.vmem [resolvable:$true] %s34_s12 }
   0x8   :  { %27 = vst [vmem:[#allocation5] sm:$0xff] %v25_v2 }
   0x9   :  { %28 = vst [vmem:[#allocation5 + $0x8] sm:$0xff] %v26_v3 }
   0xa   :  { %39 = dma.vmem_to_hbm [thread:$0]  %s35_s12, 256, %s37_s15, [#allocation4]  }
   0xb   :  { %98 = dma.done.wait [#allocation4], 256  }
   0xc   :  { %99 = vsyncadd [#allocation4], 4294967040 }
   0xd   :  { %44 = vsyncpa [#allocation3], 1 }
   0xe   :  { %45 = vsyncpa [#allocation4], 1 }

</bundles_post_ra>
